<compile_context>
chip_gen: v6e
topology: v6e:2x2x1
jax: 0.10.0
libtpu: 0.0.40
codegen_flags: <defaults>
</compile_context>

<pallas_src>
import functools

import jax
import jax.numpy as jnp
from jax.experimental import pallas as pl
from jax.experimental.pallas import tpu as pltpu


def se_block1d_kernel(x_ref, w1t_ref, w2t_ref, o_ref, *, inv_l):
    # x_ref:   (B_tile, C, L)  native dtype
    # w1t_ref: (C, H)          transpose of fc1 weight (H, C), H = C // reduction
    # w2t_ref: (H, C)          transpose of fc2 weight (C, H)
    x = x_ref[...]                                                     # native dtype

    # Squeeze: mean over L = f32-accumulated sum * (1/L)  (divide folded into a
    # constant multiply; no full-tile f32 materialization of x).
    y = jnp.sum(x, axis=-1, dtype=jnp.float32) * inv_l                 # (B_t, C) f32

    # Excitation: Linear -> ReLU -> Linear -> Sigmoid (bias-free), all in f32.
    h = jnp.dot(y, w1t_ref[...].astype(jnp.float32),
                preferred_element_type=jnp.float32)                    # (B_t, H)
    h = jnp.maximum(h, 0.0)
    s = jnp.dot(h, w2t_ref[...].astype(jnp.float32),
                preferred_element_type=jnp.float32)                    # (B_t, C)
    s = jax.nn.sigmoid(s)

    # Scale: broadcast per-(batch, channel) gate over L in the native dtype.
    o_ref[...] = (x * s.astype(x.dtype)[:, :, None]).astype(o_ref.dtype)


def se_block1d(x, w1, w2, *, donate_x=False):
    """x: (B, C, L); w1: (H, C) fc1 weight; w2: (C, H) fc2 weight."""
    B, C, L = x.shape
    H = w1.shape[0]
    assert w1.shape == (H, C) and w2.shape == (C, H)

    # Pre-transpose weights (glue, stays in plain JAX) so in-kernel matmuls are
    # plain row-major (B,C)@(C,H) and (B,H)@(H,C).
    w1t = jnp.transpose(w1)   # (C, H)
    w2t = jnp.transpose(w2)   # (H, C)

    # --- Pick B_tile against a v7x-safe VMEM budget. ---------------------------
    # Double-buffered footprint ~ 2*(in tile) + 2*(out tile) = 4 * tile_bytes.
    itemsize = jnp.dtype(x.dtype).itemsize
    bytes_per_sample = C * L * itemsize
    io_budget = 32 * 1024 * 1024                      # in+out, double-buffered
    max_bt = max(1, io_budget // (4 * bytes_per_sample))
    b_tile = int(min(B, max_bt))
    while B % b_tile != 0:                            # keep blocks evenly divided
        b_tile -= 1

    tile_bytes = b_tile * bytes_per_sample
    weight_bytes = 2 * C * H * 4
    vmem_limit = int(min(64 << 20,
                         max(48 << 20, 4 * tile_bytes + 2 * weight_bytes + (8 << 20))))

    kernel = functools.partial(se_block1d_kernel, inv_l=1.0 / L)

    return pl.pallas_call(
        kernel,
        out_shape=jax.ShapeDtypeStruct((B, C, L), x.dtype),
        grid=(B // b_tile,),
        in_specs=[
            # x: tiled over batch; full (C, L) per block (gate needs full L & C).
            pl.BlockSpec((b_tile, C, L), lambda b: (b, 0, 0)),
            # tiny weights: constant index_map -> stay resident in VMEM.
            pl.BlockSpec((C, H), lambda b: (0, 0)),
            pl.BlockSpec((H, C), lambda b: (0, 0)),
        ],
        out_specs=pl.BlockSpec((b_tile, C, L), lambda b: (b, 0, 0)),
        compiler_params=pltpu.CompilerParams(
            dimension_semantics=("parallel",),        # shard batch across TCs (v7x)
            vmem_limit_bytes=vmem_limit,
        ),
        input_output_aliases={0: 0} if donate_x else {},
    )(x, w1t, w2t)


def se_block1d_ref(x, w1, w2):
    """Pure-JAX reference mirroring the PyTorch forward."""
    y = jnp.mean(x.astype(jnp.float32), axis=-1)          # pool -> (B, C)
    h = jnp.maximum(y @ w1.astype(jnp.float32).T, 0.0)    # fc1 + ReLU
    s = jax.nn.sigmoid(h @ w2.astype(jnp.float32).T)      # fc2 + Sigmoid
    return (x.astype(jnp.float32) * s[:, :, None]).astype(x.dtype)


if __name__ == "__main__":
    B, C, L = 2, 8, 16
    reduction_ratio = 1
    H = C // reduction_ratio

    key = jax.random.PRNGKey(0)
    kx, k1, k2 = jax.random.split(key, 3)

    x = jax.random.normal(kx, (B, C, L), dtype=jnp.float32)
    # Deterministic synthetic parameters (PyTorch nn.Linear weight shapes).
    w1 = jax.random.normal(k1, (H, C), dtype=jnp.float32) * (1.0 / jnp.sqrt(C))
    w2 = jax.random.normal(k2, (C, H), dtype=jnp.float32) * (1.0 / jnp.sqrt(H))

    out = se_block1d(x, w1, w2)
    out = jax.block_until_ready(out)

    ref = se_block1d_ref(x, w1, w2)
    assert out.shape == (B, C, L)
    assert jnp.allclose(out, ref, atol=1e-5, rtol=1e-5), "mismatch vs reference"

    print("KERNEL_OK")
</pallas_src>

<mosaic_0001>
module attributes {stable_mosaic.version = 11 : i64} {
  func.func @se_block1d_kernel(%arg0: i32, %arg1: memref<2x8x16xf32, #tpu.memory_space<vmem>>, %arg2: memref<8x8xf32, #tpu.memory_space<vmem>>, %arg3: memref<8x8xf32, #tpu.memory_space<vmem>>, %arg4: memref<2x8x16xf32, #tpu.memory_space<vmem>>) attributes {dimension_semantics = [#tpu.dimension_semantics<parallel>], iteration_bounds = array<i64: 1>, scalar_prefetch = 0 : i64, scratch_operands = 0 : i64, tpu.core_type = #tpu.core_type<tc>, window_params = [{transform_indices = @transform_0, window_bounds = array<i64: 2, 8, 16>}, {pipeline_mode = #tpu.pipeline_mode<synchronous>, transform_indices = @transform_1, window_bounds = array<i64: 8, 8>}, {pipeline_mode = #tpu.pipeline_mode<synchronous>, transform_indices = @transform_2, window_bounds = array<i64: 8, 8>}, {transform_indices = @transform_3, window_bounds = array<i64: 2, 8, 16>}]} {
    %c0 = arith.constant 0 : index
    %c0_0 = arith.constant 0 : index
    %c0_1 = arith.constant 0 : index
    %0 = vector.load %arg1[%c0, %c0_0, %c0_1] : memref<2x8x16xf32, #tpu.memory_space<vmem>>, vector<2x8x16xf32>
    %cst = arith.constant dense<0.000000e+00> : vector<2x8xf32>
    %1 = vector.multi_reduction <add>, %0, %cst [2] : vector<2x8x16xf32> to vector<2x8xf32>
    %cst_2 = arith.constant 6.250000e-02 : f32
    %2 = vector.broadcast %cst_2 : f32 to vector<2x8xf32>
    %3 = arith.mulf %1, %2 : vector<2x8xf32>
    %c0_3 = arith.constant 0 : index
    %c0_4 = arith.constant 0 : index
    %4 = vector.load %arg2[%c0_3, %c0_4] : memref<8x8xf32, #tpu.memory_space<vmem>>, vector<8x8xf32>
    %cst_5 = arith.constant dense<0.000000e+00> : vector<2x8xf32>
    %5 = tpu.matmul %3, %4, %cst_5 {dimension_numbers = #tpu.dot_dimension_numbers<[1], [0], [0], [1], [0, 0, 1, 1], [], []>} : vector<2x8xf32>, vector<8x8xf32>, vector<2x8xf32> -> vector<2x8xf32>
    %cst_6 = arith.constant 0.000000e+00 : f32
    %6 = vector.broadcast %cst_6 : f32 to vector<2x8xf32>
    %7 = arith.maximumf %5, %6 : vector<2x8xf32>
    %c0_7 = arith.constant 0 : index
    %c0_8 = arith.constant 0 : index
    %8 = vector.load %arg3[%c0_7, %c0_8] : memref<8x8xf32, #tpu.memory_space<vmem>>, vector<8x8xf32>
    %cst_9 = arith.constant dense<0.000000e+00> : vector<2x8xf32>
    %9 = tpu.matmul %7, %8, %cst_9 {dimension_numbers = #tpu.dot_dimension_numbers<[1], [0], [0], [1], [0, 0, 1, 1], [], []>} : vector<2x8xf32>, vector<8x8xf32>, vector<2x8xf32> -> vector<2x8xf32>
    %10 = arith.negf %9 : vector<2x8xf32>
    %11 = math.exp %10 : vector<2x8xf32>
    %cst_10 = arith.constant 1.000000e+00 : f32
    %12 = vector.broadcast %cst_10 : f32 to vector<2x8xf32>
    %13 = arith.addf %12, %11 : vector<2x8xf32>
    %14 = arith.divf %12, %13 : vector<2x8xf32>
    %15 = vector.shape_cast %14 : vector<2x8xf32> to vector<2x8x1xf32>
    %16 = vector.broadcast %15 : vector<2x8x1xf32> to vector<2x8x16xf32>
    %17 = arith.mulf %0, %16 : vector<2x8x16xf32>
    %c0_11 = arith.constant 0 : index
    %c0_12 = arith.constant 0 : index
    %c0_13 = arith.constant 0 : index
    %18 = vector.load %arg4[%c0_11, %c0_12, %c0_13] : memref<2x8x16xf32, #tpu.memory_space<vmem>>, vector<2x8x16xf32>
    tpu.vector_store %arg4[%c0_11, %c0_12, %c0_13], %17 {strides = array<i32>} : memref<2x8x16xf32, #tpu.memory_space<vmem>>, vector<2x8x16xf32>,
    return
  }
  func.func @transform_0(%arg0: i32) -> (i32, i32, i32) {
    %c0_i32 = arith.constant 0 : i32
    %c0_i32_0 = arith.constant 0 : i32
    %c0_i32_1 = arith.constant 0 : i32
    return %arg0, %c0_i32, %c0_i32_0 : i32, i32, i32
  }
  func.func @transform_1(%arg0: i32) -> (i32, i32) {
    %c0_i32 = arith.constant 0 : i32
    %c0_i32_0 = arith.constant 0 : i32
    %c0_i32_1 = arith.constant 0 : i32
    return %c0_i32, %c0_i32_0 : i32, i32
  }
  func.func @transform_2(%arg0: i32) -> (i32, i32) {
    %c0_i32 = arith.constant 0 : i32
    %c0_i32_0 = arith.constant 0 : i32
    %c0_i32_1 = arith.constant 0 : i32
    return %c0_i32, %c0_i32_0 : i32, i32
  }
  func.func @transform_3(%arg0: i32) -> (i32, i32, i32) {
    %c0_i32 = arith.constant 0 : i32
    %c0_i32_0 = arith.constant 0 : i32
    %c0_i32_1 = arith.constant 0 : i32
    return %arg0, %c0_i32, %c0_i32_0 : i32, i32, i32
  }
}

</mosaic_0001>

<bundles_post_ra>
// kernel: tpu_custom_call.1
= control target key start
LH: loop header
LB: loop body
LE: loop exit
PB: predicated region body
PF: predicated region fallthrough
CT: control target
= control target key end

     0   :  { %8 = vsyncpa [#allocation3], 0  ;;  %s433_s0 = inlined_call_operand.hbm [shape: f32[2,8,16], index: 0, kind: input, shape index: {}]   ;;  %s434_s1 = inlined_call_operand.hbm [shape: f32[8,8], index: 1, kind: input, shape index: {}]   ;;  %s435_s2 = inlined_call_operand.hbm [shape: f32[8,8], index: 2, kind: input, shape index: {}]   ;;  %s436_s3 = inlined_call_operand.hbm [shape: f32[2,8,16], index: 3, kind: output, shape index: {}]  }
   0x1   :  { %9 = vsyncpa [#allocation6], 0 }
   0x2   :  { %10 = vsyncpa [#allocation4], 0  ;;  %s383_s12 = smov [#allocation5]   ;;  %s384_s14 = smov [#allocation2]  }
   0x3   :  { %s29_s13 = sshll.u32 %s383_s12, 4  ;;  %s16_s15 = sshll.u32 %s384_s14, 4  ;;  %s30_s13 = int_to_ptr.vmem [resolvable:$true] %s29_s13  ;;  %s17_s15 = int_to_ptr.vmem [resolvable:$true] %s16_s15 }
   0x4   :  { %s305_s16 = scalar_lea.vmem %s30_s13, 128  ;;  %p310_p1 = scmp.lt.s32.totalorder %s30_s13, %s30_s13 }
   0x5   :  { %p306_p0 = scmp.ne.s32.totalorder %s30_s13, %s305_s16  ;;  %p311_p2 = scmp.lt.s32.totalorder %s305_s16, %s305_s16 }
   0x7   :  { %p312_p3 = por %p311_p2, %p310_p1 }
   0x9   :  { %p313_p4 = pnand %p312_p3, %p306_p0 }
   0xb   :  { %316 = shalt.err (!%p313_p4)
}
   0xc   :  { %32 = dma.hbm_to_vmem [thread:$0]  %s434_s1, 128, %s30_s13, [#allocation6]  }
   0xd   :  { %s325_s19 = scalar_lea.vmem %s17_s15, 256  ;;  %p330_p6 = scmp.lt.s32.totalorder %s17_s15, %s17_s15 }
   0xe   :  { %p326_p5 = scmp.ne.s32.totalorder %s17_s15, %s325_s19  ;;  %p331_p7 = scmp.lt.s32.totalorder %s325_s19, %s325_s19 }
  0x10   :  { %p332_p8 = por %p331_p7, %p330_p6 }
  0x12   :  { %p333_p9 = pnand %p332_p8, %p326_p5 }
  0x14   :  { %336 = shalt.err (!%p333_p9)
}
  0x15   :  { %s385_s20 = smov 128   ;;  %s386_s21 = smov 8  }
  0x16   :  { %22 = dma.hbm_to_vmem [thread:$0]  %s433_s0, 256, %s17_s15, [#allocation3], %s385_s20, %s385_s20, %s386_s21  }
  0x17   :  { %s387_s24 = smov [#allocation7]  }
  0x18   :  { %s39_s25 = sshll.u32 %s387_s24, 4  ;;  %s40_s25 = int_to_ptr.vmem [resolvable:$true] %s39_s25 }
  0x19   :  { %s345_s1 = scalar_lea.vmem %s40_s25, 128  ;;  %p350_p11 = scmp.lt.s32.totalorder %s40_s25, %s40_s25 }
  0x1a   :  { %p346_p10 = scmp.ne.s32.totalorder %s40_s25, %s345_s1  ;;  %p351_p12 = scmp.lt.s32.totalorder %s345_s1, %s345_s1 }
  0x1c   :  { %p352_p13 = por %p351_p12, %p350_p11 }
  0x1e   :  { %p353_p0 = pnand %p352_p13, %p346_p10 }
  0x20   :  { %356 = shalt.err (!%p353_p0)
}
  0x21   :  { %42 = dma.hbm_to_vmem [thread:$0]  %s435_s2, 128, %s40_s25, [#allocation6]  }
  0x22   :  { %377 = dma.done.wait [#allocation3], 256  }
  0x23   :  { %378 = vsyncadd [#allocation3], 4294967040 }
  0x24   :  { %379 = dma.done.wait [#allocation6], 256  }
  0x25   :  { %380 = vsyncadd [#allocation6], 4294967040  ;;  %vm54_vm0 = vcmask 130048   ;;  %v52_v0 = vld [vmem:[#allocation2] sm:$0xff]  ;;  %v53_v1 = vld [vmem:[#allocation2 + $0x8] sm:$0xff]  ;;  %v388_v5 = vmov 0.0   ;;  %v66_v6 = vlaneseq }
  0x26   :  { %v55_v2 = vsel %vm54_vm0, %v52_v0, 0.0  ;;  %v58_v3 = vsel %vm54_vm0, %v53_v1, 0.0  ;;  %v63_v4 = vld [vmem:[#allocation5] sm:$0xff]  ;;  %275 = vmatprep.subr.mxu0 %v388_v5  ;;  %vm389_vm1 = vmmov 0   ;;  %280 = vmatprep.subr.mxu1 %v388_v5  ;;  %vm76_vm2 = vcmask 1041409   ;;  %v152_v17 = vld [vmem:[#allocation7] sm:$0xff] }
  0x27   :  { %56 = vadd.xlane.f32.xlu0 %v55_v2  ;;  %277 = vmatprep.mubr.msk.f32.mxu0 %vm389_vm1, %v388_v5  ;;  %v67_v7 = vand.u32 127, %v66_v6  ;;  %v69_v8 = vshrl.u32 %v66_v6, 7  ;;  %vm78_vm3 = vcmask 64512   ;;  %s390_s0 = smov [#allocation8]  }
  0x28   :  { %276 = vmatpush3.msra.mxu0 %v63_v4  ;;  %282 = vmatprep.mubr.msk.f32.mxu1 %vm389_vm1, %v388_v5  ;;  %s255_s2 = sshll.u32 %s390_s0, 4  ;;  %s256_s2 = int_to_ptr.vmem [resolvable:$true] %s255_s2 }
  0x29   :  { %v70_v10 = vsub.s32 %v67_v7, %v69_v8  ;;  %281 = vmatpush3.msra.mxu1 %v152_v17  ;;  %v234_v26 = vsub.s32 0, %v69_v8  ;;  %v241_v29 = vsub.s32 1, %v69_v8  ;;  %s357_s28 = scalar_lea.vmem %s256_s2, 256  ;;  %p362_p2 = scmp.lt.s32.totalorder %s256_s2, %s256_s2 }
  0x2a   :  { %p358_p1 = scmp.ne.s32.totalorder %s256_s2, %s357_s28  ;;  %p363_p3 = scmp.lt.s32.totalorder %s357_s28, %s357_s28 }
  0x2b   :  { %59 = vadd.xlane.f32.xlu0 %v58_v3 }
  0x2c   :  { %p364_p4 = por %p363_p3, %p362_p2 }
  0x2e   :  { %p365_p5 = pnand %p364_p4, %p358_p1 }
  0xb0   :  { %v57_v9 = vpop.xlane.xlu0 %56 }
  0xb1   :  { %v61_v11 = vmul.f32 0.0625, %v57_v9 }
  0xb3   :  { %v71_v14 = vrot.slane %v61_v11, %v70_v10 }
  0xb4   :  { %v60_v12 = vpop.xlane.xlu0 %59 }
  0xb5   :  { %v62_v13 = vmul.f32 0.0625, %v60_v12 }
  0xb7   :  { %v75_v15 = vrot.slane %v62_v13, %v70_v10 }
  0xb9   :  { %v77_v16 = vsel %vm76_vm2, %v75_v15, %v71_v14 }
  0xba   :  { %278 = vmatmul.mubr.msk.f32.vlgmr.msra.gmra.mxu0 %vm78_vm3, %v77_v16 }
 0x17a   :  { %v147_v18 = vpop.f32.mrf.mxu0 }
 0x17b   :  { %v151_v19 = vmax.f32 %v147_v18, 0.0 }
 0x17c   :  { %v279_v20 = vpop.f32.mrf.mxu0 }
 0x17d   :  { %283 = vmatmul.mubr.msk.f32.vlgmr.msra.gmra.mxu1 %vm78_vm3, %v151_v19 }
 0x23d   :  { %v222_v21 = vpop.f32.mrf.mxu1 }
 0x23e   :  { %v270_v22 = vmul.f32 -1.442695, %v222_v21 }
 0x23f   :  { %v284_v23 = vpop.f32.mrf.mxu1 }
 0x240   :  { %293 = vpow2.f32 %v270_v22 }
 0x24d   :  { %v294_v24 = vpop.eup %293 }
 0x24e   :  { %v229_v25 = vadd.f32 1.0, %v294_v24 }
 0x250   :  { %295 = vrcp.f32 %v229_v25 }
 0x25d   :  { %v296_v27 = vpop.eup %295 }
 0x25e   :  { %v235_v28 = vrot.slane %v296_v27, %v234_v26  ;;  %v242_v30 = vrot.slane %v296_v27, %v241_v29 }
 0x260   :  { %237 = vbcast.lane.b32.xlu1 %v235_v28, 256 }
 0x264   :  { %244 = vbcast.lane.b32.xlu1 %v242_v30, 256 }
 0x2d2   :  { %v238_v31 = vpop.permute.xlu1 %237 }
 0x2d3   :  { %v246_v32 = vmul.f32 %v238_v31, %v52_v0 }
 0x2d5   :  { %248 = vst.msk [vmem:[#allocation8] sm:$0xff] %vm54_vm0, %v246_v32 }
 0x2d6   :  { %v245_v33 = vpop.permute.xlu1 %244 }
 0x2d7   :  { %v247_v34 = vmul.f32 %v245_v33, %v53_v1 }
 0x2d9   :  { %249 = vst.msk [vmem:[#allocation8 + $0x8] sm:$0xff] %vm54_vm0, %v247_v34 }
 0x2da   :  { %368 = shalt.err (!%p365_p5)
}
 0x2db   :  { %261 = dma.vmem_to_hbm [thread:$0]  %s256_s2, 256, %s436_s3, [#allocation4], %s385_s20, %s385_s20, %s386_s21  }
 0x2dc   :  { %381 = dma.done.wait [#allocation4], 256  }
 0x2dd   :  { %382 = vsyncadd [#allocation4], 4294967040 }
 0x2de   :  { %265 = vsyncpa [#allocation3], 1 }
 0x2df   :  { %266 = vsyncpa [#allocation6], 1 }
 0x2e0   :  { %267 = vsyncpa [#allocation4], 1 }

</bundles_post_ra>
